<compile_context>
chip_gen: v7x
topology: tpu7x:2x2x1
jax: 0.10.0
libtpu: 0.0.40
codegen_flags: <defaults>
</compile_context>

<pallas_src>
import jax
import jax.numpy as jnp
from jax.experimental import pallas as pl
from jax.experimental.pallas import tpu as pltpu


# ------------------------------ tiling helpers -------------------------------
def _round_up(x, m):
    return ((x + m - 1) // m) * m


def _choose_lane_tile(total_lanes, max_tile=8192, min_steps=2):
    """Pick a lane tile (multiple of 128) for the fused Ntot*H*W axis.

    Prefers >= `min_steps` evenly sized grid steps (megacore on v7x) and caps
    the tile at `max_tile` lanes so double-buffered in+out blocks stay well
    inside VMEM on all chips (incl. v7x's 64 MiB).
    """
    t128 = _round_up(total_lanes, 128)
    if t128 <= 128 * min_steps:
        tile = t128
    else:
        tile = min(max_tile, _round_up((t128 + min_steps - 1) // min_steps, 128))
    padded = _round_up(total_lanes, tile)
    return tile, padded


# ----------------------------- Pallas kernel --------------------------------
def _main_module_kernel(x_ref, w_ref, b_ref, o_ref):
    # x_ref: (C_in, T)   w_ref: (C_out, C_in)   b_ref: (C_out, 1)   o_ref: (C_out, T)
    # Channel mix on the MXU with f32 accumulation; bias + ReLU in f32 on the
    # accumulator (cheap on every chip incl. v5e); cast only at the store.
    y = jnp.dot(w_ref[...], x_ref[...], preferred_element_type=jnp.float32)
    y = jnp.maximum(y + b_ref[...], 0.0)
    o_ref[...] = y.astype(o_ref.dtype)


def main_module_pallas(x2d, weight, bias, *, io_dtype=None, max_lane_tile=8192):
    """1x1 conv + bias + ReLU on lane-dense input.

    x2d:    (C_in, L)  with L = Ntot*H*W fused on the lane axis
    weight: (C_out, C_in)
    bias:   (C_out,)
    returns (C_out, L)
    """
    if io_dtype is not None:
        x2d = x2d.astype(io_dtype)
        weight = weight.astype(io_dtype)
    c_in, total = x2d.shape
    c_out = weight.shape[0]
    bias2d = bias.reshape(c_out, 1).astype(jnp.float32)

    tile, padded = _choose_lane_tile(total, max_tile=max_lane_tile)
    if padded != total:
        x2d = jnp.pad(x2d, ((0, 0), (0, padded - total)))
    grid = (padded // tile,)

    # Explicit VMEM budget: double-buffered input + output lane tiles plus the
    # (tiny) weights; headroom added, capped below v7x's 64 MiB physical VMEM.
    itemsize = jnp.dtype(x2d.dtype).itemsize
    vmem_need = 2 * (c_in + c_out) * tile * itemsize \
                + (c_out * c_in + c_out) * 4 + (1 << 20)
    vmem_limit = int(min(max(vmem_need, 16 << 20), 60 << 20))

    # TODO(synk): for large channel counts (C_in/C_out >= 128) add a K-tile
    # grid axis ("arbitrary", last) with an f32 VMEM accumulator scratch.
    out = pl.pallas_call(
        _main_module_kernel,
        out_shape=jax.ShapeDtypeStruct((c_out, padded), x2d.dtype),
        grid_spec=pltpu.PrefetchScalarGridSpec(
            num_scalar_prefetch=0,
            grid=grid,
            in_specs=[
                pl.BlockSpec((c_in, tile), lambda j: (0, j)),
                pl.BlockSpec((c_out, c_in), lambda j: (0, 0)),
                pl.BlockSpec((c_out, 1), lambda j: (0, 0)),
            ],
            out_specs=pl.BlockSpec((c_out, tile), lambda j: (0, j)),
        ),
        compiler_params=pltpu.CompilerParams(
            dimension_semantics=("parallel",),
            vmem_limit_bytes=vmem_limit),
    )(x2d, weight, bias2d)

    if padded != total:
        out = out[:, :total]
    return out


# ------------------------ augmentation submodules ----------------------------
def aug_hflip(x, reverse=False):
    # flip along W; self-inverse, so `reverse` is ignored (same op)
    return jnp.flip(x, axis=-1)


def aug_vflip(x, reverse=False):
    # flip along H; self-inverse
    return jnp.flip(x, axis=-2)


AUG_MODULES = (aug_hflip, aug_vflip)


# ------------------------------ Compose.forward ------------------------------
def compose_forward(x, weight, bias, reverse=False, *,
                    pointwise_main=True, io_dtype=None):
    """Mirrors Compose.forward semantics.

    x: (N, C_in, H, W)  ->  (N, 1 + n_augs, C_out, H, W)

    pointwise_main=True exploits that the 1x1-conv main module commutes with
    the spatial flips (valid only for pointwise main modules); otherwise the
    general augmented-batch path is used.
    """
    n, c_in, h, w = x.shape
    n_aug = len(AUG_MODULES)
    c_out = weight.shape[0]

    if pointwise_main:
        # Run main_module once on the N originals; derive augmented outputs by
        # flipping the output.  With reverse=True the flips cancel entirely.
        x2d = jnp.transpose(x, (1, 0, 2, 3)).reshape(c_in, n * h * w)
        y2d = main_module_pallas(x2d, weight, bias, io_dtype=io_dtype)
        y = y2d.reshape(c_out, n, h, w).transpose(1, 0, 2, 3)   # (N, C_out, H, W)
        if reverse:
            slices = [y] * (1 + n_aug)          # aug_rev ∘ main ∘ aug_fwd == main
        else:
            slices = [y] + [aug(y, reverse=False) for aug in AUG_MODULES]
        results = jnp.stack(slices, axis=0)     # (1+A, N, C_out, H, W)
    else:
        # General path: augs = cat([x] + [aug(x) for aug in aug_modules], dim=0)
        augs = jnp.concatenate(
            [x] + [aug(x, reverse=False) for aug in AUG_MODULES], axis=0)
        ntot = augs.shape[0]                                   # (1+A)*N
        x2d = jnp.transpose(augs, (1, 0, 2, 3)).reshape(c_in, ntot * h * w)
        y2d = main_module_pallas(x2d, weight, bias, io_dtype=io_dtype)
        results = y2d.reshape(c_out, ntot, h, w).transpose(1, 0, 2, 3)
        results = results.reshape(1 + n_aug, n, c_out, h, w)
        if reverse:
            pieces = [results[0]] + [aug(results[i + 1], reverse=True)
                                     for i, aug in enumerate(AUG_MODULES)]
            results = jnp.stack(pieces, axis=0)

    # results.transpose(0, 1)
    return jnp.swapaxes(results, 0, 1)          # (N, 1+A, C_out, H, W)


# -------------------------------- reference ----------------------------------
def compose_forward_ref(x, weight, bias, reverse=False):
    n, c_in, h, w = x.shape
    n_aug = len(AUG_MODULES)
    augs = jnp.concatenate([x] + [aug(x) for aug in AUG_MODULES], axis=0)
    y = jnp.einsum("oc,nchw->nohw", weight, augs) + bias[None, :, None, None]
    y = jnp.maximum(y, 0.0)
    y = y.reshape(1 + n_aug, n, weight.shape[0], h, w)
    if reverse:
        pieces = [y[0]] + [aug(y[i + 1], reverse=True)
                           for i, aug in enumerate(AUG_MODULES)]
        y = jnp.stack(pieces, axis=0)
    return jnp.swapaxes(y, 0, 1)


# ----------------------------------- main ------------------------------------
if __name__ == "__main__":
    key = jax.random.PRNGKey(0)
    kx, kw, kb = jax.random.split(key, 3)

    N, C_IN, H, W = 2, 4, 16, 16
    C_OUT = 8

    x = jax.random.normal(kx, (N, C_IN, H, W), dtype=jnp.float32)
    weight = jax.random.normal(kw, (C_OUT, C_IN), dtype=jnp.float32) * 0.1
    bias = jax.random.normal(kb, (C_OUT,), dtype=jnp.float32) * 0.1

    expected_shape = (N, 1 + len(AUG_MODULES), C_OUT, H, W)

    for reverse in (False, True):
        ref = compose_forward_ref(x, weight, bias, reverse=reverse)

        # Fast path: pointwise main module commutes with flips.
        out_fast = jax.block_until_ready(
            compose_forward(x, weight, bias, reverse=reverse, pointwise_main=True))
        assert out_fast.shape == expected_shape, out_fast.shape
        assert jnp.allclose(out_fast, ref, atol=1e-5, rtol=1e-5), \
            f"fast path mismatch (reverse={reverse})"

        # General path: explicit augmented batch through the Pallas kernel.
        out_gen = jax.block_until_ready(
            compose_forward(x, weight, bias, reverse=reverse, pointwise_main=False))
        assert out_gen.shape == expected_shape, out_gen.shape
        assert jnp.allclose(out_gen, ref, atol=1e-5, rtol=1e-5), \
            f"general path mismatch (reverse={reverse})"

    # Optional bf16 I/O (halves HBM traffic on this memory-bound kernel);
    # loose tolerance for the reduced-precision inputs.
    ref = compose_forward_ref(x, weight, bias, reverse=True)
    out_bf16 = jax.block_until_ready(
        compose_forward(x, weight, bias, reverse=True,
                        pointwise_main=True, io_dtype=jnp.bfloat16))
    assert out_bf16.shape == expected_shape, out_bf16.shape
    assert jnp.allclose(out_bf16.astype(jnp.float32), ref, atol=5e-2, rtol=5e-2), \
        "bf16 path mismatch"

    print("KERNEL_OK")
</pallas_src>

<mosaic_0001>
module attributes {stable_mosaic.version = 11 : i64} {
  func.func @_main_module_kernel(%arg0: i32, %arg1: memref<4x256xf32, #tpu.memory_space<vmem>>, %arg2: memref<8x4xf32, #tpu.memory_space<vmem>>, %arg3: memref<8x1xf32, #tpu.memory_space<vmem>>, %arg4: memref<8x256xf32, #tpu.memory_space<vmem>>) attributes {dimension_semantics = [#tpu.dimension_semantics<parallel>], iteration_bounds = array<i64: 2>, scalar_prefetch = 0 : i64, scratch_operands = 0 : i64, tpu.core_type = #tpu.core_type<tc>, window_params = [{transform_indices = @transform_0, window_bounds = array<i64: 4, 256>}, {pipeline_mode = #tpu.pipeline_mode<synchronous>, transform_indices = @transform_1, window_bounds = array<i64: 8, 4>}, {pipeline_mode = #tpu.pipeline_mode<synchronous>, transform_indices = @transform_2, window_bounds = array<i64: 8, 1>}, {transform_indices = @transform_3, window_bounds = array<i64: 8, 256>}]} {
    %c0 = arith.constant 0 : index
    %c0_0 = arith.constant 0 : index
    %0 = vector.load %arg2[%c0, %c0_0] : memref<8x4xf32, #tpu.memory_space<vmem>>, vector<8x4xf32>
    %c0_1 = arith.constant 0 : index
    %c0_2 = arith.constant 0 : index
    %1 = vector.load %arg1[%c0_1, %c0_2] : memref<4x256xf32, #tpu.memory_space<vmem>>, vector<4x256xf32>
    %cst = arith.constant dense<0.000000e+00> : vector<8x256xf32>
    %2 = tpu.matmul %0, %1, %cst {dimension_numbers = #tpu.dot_dimension_numbers<[1], [0], [0], [1], [0, 0, 1, 1], [], []>} : vector<8x4xf32>, vector<4x256xf32>, vector<8x256xf32> -> vector<8x256xf32>
    %c0_3 = arith.constant 0 : index
    %c0_4 = arith.constant 0 : index
    %3 = vector.load %arg3[%c0_3, %c0_4] : memref<8x1xf32, #tpu.memory_space<vmem>>, vector<8x1xf32>
    %4 = vector.broadcast %3 : vector<8x1xf32> to vector<8x256xf32>
    %5 = arith.addf %2, %4 : vector<8x256xf32>
    %cst_5 = arith.constant 0.000000e+00 : f32
    %6 = vector.broadcast %cst_5 : f32 to vector<8x256xf32>
    %7 = arith.maximumf %5, %6 : vector<8x256xf32>
    %c0_6 = arith.constant 0 : index
    %c0_7 = arith.constant 0 : index
    %8 = vector.load %arg4[%c0_6, %c0_7] : memref<8x256xf32, #tpu.memory_space<vmem>>, vector<8x256xf32>
    tpu.vector_store %arg4[%c0_6, %c0_7], %7 {strides = array<i32>} : memref<8x256xf32, #tpu.memory_space<vmem>>, vector<8x256xf32>,
    return
  }
  func.func @transform_0(%arg0: i32) -> (i32, i32) {
    %c0_i32 = arith.constant 0 : i32
    %c0_i32_0 = arith.constant 0 : i32
    return %c0_i32, %arg0 : i32, i32
  }
  func.func @transform_1(%arg0: i32) -> (i32, i32) {
    %c0_i32 = arith.constant 0 : i32
    %c0_i32_0 = arith.constant 0 : i32
    %c0_i32_1 = arith.constant 0 : i32
    return %c0_i32, %c0_i32_0 : i32, i32
  }
  func.func @transform_2(%arg0: i32) -> (i32, i32) {
    %c0_i32 = arith.constant 0 : i32
    %c0_i32_0 = arith.constant 0 : i32
    %c0_i32_1 = arith.constant 0 : i32
    return %c0_i32, %c0_i32_0 : i32, i32
  }
  func.func @transform_3(%arg0: i32) -> (i32, i32) {
    %c0_i32 = arith.constant 0 : i32
    %c0_i32_0 = arith.constant 0 : i32
    return %c0_i32, %arg0 : i32, i32
  }
}

</mosaic_0001>

<bundles_post_ra>
// kernel: tpu_custom_call.1
= control target key start
LH: loop header
LB: loop body
LE: loop exit
PB: predicated region body
PF: predicated region fallthrough
CT: control target
= control target key end

     0   :  { %8 = vsyncpa [#allocation3], 0  ;;  %s591_s0 = inlined_call_operand.vmem [shape: f32[4,512], index: 0, kind: input, shape index: {}]   ;;  %s592_s1 = inlined_call_operand.vmem [shape: f32[8,4], index: 1, kind: input, shape index: {}]   ;;  %s593_s2 = inlined_call_operand.vmem [shape: f32[8,1], index: 2, kind: input, shape index: {}]   ;;  %s594_s3 = inlined_call_operand.hbm [shape: f32[8,512], index: 3, kind: output, shape index: {}]  }
   0x1   :  { %10 = vsyncpa [#allocation3 + $0x1], 0  ;;  %s486_s12 = smov 0   ;;  %s488_s13 = smov 0  }
   0x2   :  { %s490_s14 = smov 0   ;;  %s492_s15 = smov 0  }
   0x3 LB: > { %s507_s16 = sadd.s32 4294967295, %s461_s15   ;;  %s340_s17 = sadd.s32 4294967294, %s461_s15   ;;  %s461_s15 = sphi %s492_s15, %s600_s15   ;;  %s457_s14 = sphi %s490_s14, %s599_s14   ;;  %s453_s13 = sphi %s488_s13, %s598_s13   ;;  %s449_s12 = sphi %s486_s12, %s597_s12  }
   0x4   : > { %s511_s18 = sadd.s32 1, %s461_s15   ;;  %s91_s19 = sadd.s32 1, %s457_s14 }
   0x5   : > { %s88_s20 = ssub.s32 %s461_s15, %s511_s18  ;;  %p101_p0 = scmp.ne.s32.totalorder %s457_s14, %s453_s13 }
   0x6   : > { %p89_p1 = scmp.eq.s32.totalorder %s88_s20, 0  ;;  %p102_p2 = scmp.eq.s32.totalorder %s507_s16, 1 }
   0x7   : > { %p107_p3 = scmp.ne.s32.totalorder %s453_s13, %s449_s12  ;;  %p108_p4 = scmp.eq.s32.totalorder %s340_s17, 1 }
   0x8   : > { %s522_s21 = scalar_select %p89_p1, %s457_s14, %s91_s19  }
   0x9   : > { %p524_p5 = por %p102_p2, %p101_p0  ;;  %p528_p6 = por %p108_p4, %p107_p3 }
   0xa   : > { %p343_p7 = scmp.ge.s32.totalorder %s461_s15, 1  ;;  %p141_p8 = scmp.lt.s32.totalorder %s461_s15, 3 }
   0xc   : > { %p142_p9 = pnand %p343_p7, %p141_p8 }
   0xd   : > { %s345_s24 = sshll.u32 (!%p142_p9), %s507_s16, 1  ;;  %v463_v0 = vmov (!%p142_p9), 0.0   ;;  %v464_v1 = vmov (!%p142_p9), 0   ;;  %v174_v2 = vld [vmem:[%s593_s2] sm:$0xff] (!%p142_p9)  ;;  %vm186_vm0 = vcmask (!%p142_p9), 1043456   ;;  %vm182_vm1 = vcmask (!%p142_p9), 31744  }
   0xe   : > { %145 = sbr.rel (%p142_p9) target bundleno = 260 (0x104), region = 32  ;;  %p166_p10 = scmp.lt.s32.totalorder (!%p142_p9), %s345_s24, 3  ;;  %255 = vmatprep.mubr.f32.mxu0 (!%p142_p9), %v463_v0  ;;  %397 = vset.pattern.permute.xlu0 (!%p142_p9), %v464_v1  ;;  %v172_v5 = vld [vmem:[%s592_s1] sm:$0xff] (!%p142_p9) }
   0xf   : > { %177 = vperm.xlu0 (!%p142_p9), %397, %v174_v2   ;;  %s162_s6 = sand.u32 (!%p142_p9), 1, %s453_s13   ;;  %s355_s8 = sshll.u32 (!%p142_p9), %s507_s16, 8 }
  0x10   : > { %s344_s7 = sshll.u32 (!%p142_p9), %s162_s6, 4  ;;  %s549_s19 = scalar_lea.hbm (!%p142_p9), %s594_s3, %s355_s8 }
  0x11   : > { %s164_s9 = scalar_lea.vmem (!%p142_p9), [#allocation2], %s344_s7  ;;  %s267_s20 = scalar_lea.sflag (!%p142_p9), [#allocation3], %s162_s6 }
  0x12   : > { %s281_s10 = sshll.u32 (!%p142_p9), %s164_s9, 4  ;;  %s465_s16 = smov (!%p142_p9), [#allocation2]   ;;  %s551_s10 = int_to_ptr.vmem [resolvable:$true] %s281_s10 }
  0x13   : > { %s403_s25 = sshll.u32 (!%p142_p9), %s465_s16, 4  ;;  %s404_s25 = int_to_ptr.vmem [resolvable:$false] %s403_s25 }
  0x14   : > { %s405_s26 = scalar_lea.vmem (!%p142_p9), %s404_s25, 512  ;;  %p406_p0 = scmp.lt.s32.totalorder (!%p142_p9), %s551_s10, %s404_s25 }
  0x15   : > { %s602_s24 = smov (!%p166_p10, %s345_s24), 3 }
  0x16   : > { %s346_s27 = sshll.u32 %s602_s24, 2  ;;  %s399_s24 = scalar_lea.vmem %s551_s10, 256 }
  0x17   : > { %s169_s30 = scalar_lea.vmem %s591_s0, %s346_s27  ;;  %p400_p11 = scmp.ne.s32.totalorder %s551_s10, %s399_s24 }
  0x18   : > { %v173_v3 = vld [vmem:[%s169_s30] sm:$0xff]  ;;  %p407_p1 = scmp.lt.s32.totalorder %s405_s26, %s399_s24 }
  0x19   : > { %v181_v4 = vcombine.high %v173_v3, %v173_v3  ;;  %p401_p12 = pnand %p400_p11, %p524_p5 }
  0x1a   : > { %p408_p2 = por %p407_p1, %p406_p0 }
  0x1b   : > { %347 = vmatprep.subr.msk.mxu0 %vm186_vm0, %v181_v4  ;;  %p402_p13 = pneg %p401_p12 }
  0x1c   : > { %348 = vmatpush1.msk.msra.mxu0 %vm186_vm0, %v173_v3 }
  0x1d   : > { %349 = vmatmul.mubr.msk.f32.vlgmr.msra.gmra.mrb[0].mxu0 %vm182_vm1, %v172_v5  ;;  %p409_p3 = pnand %p408_p2, %p402_p13 }
  0x8e   : > { %v178_v6 = vpop.permute.xlu0 %177 }
  0xf0   : > { %v257_v7 = vpop.f32.mrb[0].mxu0 }
  0xf1   : > { %v258_v8 = vadd.f32 %v257_v7, %v178_v6  ;;  %v259_v9 = vpop.f32.mrb[1].mxu0 }
  0xf2   : > { %v260_v10 = vadd.f32 %v259_v9, %v178_v6 }
  0xf3   : > { %v262_v11 = vmax.f32 %v258_v8, 0.0 }
  0xf4   : > { %v263_v12 = vmax.f32 %v260_v10, 0.0 }
  0xf5   : > { %264 = vst [vmem:[%s164_s9] sm:$0xff] %v262_v11 }
  0xf6   : > { %265 = vst [vmem:[%s164_s9 + $0x8] sm:$0xff] %v263_v12 }
  0xf7   : > { %412 = shalt.err (!%p409_p3)
}
  0xf8   : > { %s413_s27 = scalar_lea.hbm %s549_s19, 256  ;;  %s417_s30 = scalar_lea.hbm %s594_s3, 512 }
  0xf9   : > { %p414_p4 = scmp.ne.s32.totalorder %s549_s19, %s413_s27  ;;  %p418_p9 = scmp.lt.u32.totalorder %s549_s19, %s594_s3 }
  0xfa   : > { %p419_p10 = scmp.lt.u32.totalorder %s417_s30, %s413_s27  ;;  %p421_p12 = scmp.lt.u32.totalorder %s413_s27, %s549_s19 }
  0xfb   : > { %p415_p7 = pnand %p414_p4, %p524_p5 }
  0xfc   : > { %p420_p11 = por %p419_p10, %p418_p9 }
  0xfd   : > { %p416_p8 = pneg %p415_p7 }
  0xfe   : > { %p422_p13 = por %p421_p12, %p420_p11 }
 0x100   : > { %p423_p0 = pnand %p422_p13, %p416_p8 }
 0x102   : > { %426 = shalt.err (!%p423_p0)
}
 0x103   : > { %356 = dma.vmem_to_hbm [thread:$0]  (%p524_p5), %s551_s10, 256, %s549_s19, %s267_s20  }
 0x104 PF: > { %p362_p1 = scmp.ge.s32.totalorder %s461_s15, 2  ;;  %s293_s6 = sand.u32 1, %s449_s12  }
 0x105   : > { %s294_s7 = scalar_lea.sflag [#allocation3], %s293_s6 }
 0x106   : > { %p359_p2 = pnand %p362_p1, %p528_p6 }
 0x108   : > { %444 = dma.done.wait (!%p359_p2), %s294_s7, 256  }
 0x109   : > { %446 = vsyncadd (!%p359_p2), %s294_s7, 4294967040  ;;  %p13_p3 = scmp.ge.s32.totalorder %s511_s18, 4   ;;  %s597_s12 = smov %s453_s13 }
 0x10a   : > { %s598_s13 = smov %s457_s14  ;;  %s599_s14 = smov %s522_s21 }
 0x10b   : > { %s600_s15 = smov %s511_s18  ;;  %15 = sbr.rel (!%p13_p3) target bundleno = 3 (0x3), region = 67 }
 0x112   :  { %299 = vsyncpa [#allocation3], 1 }
 0x113   :  { %301 = vsyncpa [#allocation3 + $0x1], 1 }

</bundles_post_ra>
